<compile_context>
chip_gen: v7x
topology: tpu7x:2x2x1
jax: 0.10.0
libtpu: 0.0.40
codegen_flags: <defaults>
</compile_context>

<pallas_src>
import jax
import jax.numpy as jnp
from jax.experimental import pallas as pl
from jax.experimental.pallas import tpu as pltpu

# ---- config (mirrors PASTS usage of ProgressEstimator) -----------------------
IN_DIM = 32    # decoder hidden / word_size feeding the progress head
HID_DIM = 32   # args.proj_hidden
OUT_DIM = 1    # scalar progress prediction per token


# ================================ Pallas kernel ===============================

def _progress_kernel(x_ref, w1_ref, aux_ref, o_ref):
    """Fused Linear -> bias -> ReLU -> (Dropout = identity) -> (dot w2 + b2).

    x_ref  : [TM, K]   activations (native dtype, e.g. bf16) -> MXU operand
    w1_ref : [K, H]    first-layer weight (native dtype, e.g. bf16)
    aux_ref: [3, H]    f32 packed tail params: row0=b1, row1=w2_row, row2=b2
    o_ref  : [1, TM]   lane-dense output (M on the lane axis)
    """
    # Layer 1 on the MXU: bf16-in / f32-accumulate (single-pass on v5e/v6e/v7x).
    h = jnp.dot(x_ref[...], w1_ref[...],
                preferred_element_type=jnp.float32)          # [TM, H] f32

    b1 = aux_ref[0:1, :].astype(jnp.float32)                 # [1, H]
    w2 = aux_ref[1:2, :].astype(jnp.float32)                 # [1, H]
    b2 = aux_ref[2:3, 0:1].astype(jnp.float32)               # [1, 1]

    # Bias + ReLU on the f32 accumulator (VPU). Dropout = identity (eval mode).
    h = jnp.maximum(h + b1, 0.0)

    # Layer 2 (out_dim == 1): VPU multiply + lane reduction instead of a wasteful
    # [TM, H] x [H, 1] MXU op.  Result stored lane-dense as (1, TM).
    o = jnp.sum(h * w2, axis=-1)[None, :] + b2               # [1, TM] f32
    o_ref[...] = o.astype(o_ref.dtype)


def progress_estimator(x, params, *, tile_m=512):
    """x: [..., IN_DIM] -> logits [..., 1].  One fused pallas_call for the slab.

    Pass the full [batch, seq, IN] slab in one call (all decode steps batched)
    so the custom-call dispatch + DMA setup is amortized over every token.
    """
    lead = x.shape[:-1]
    x2 = x.reshape(-1, x.shape[-1])              # no dtype cast in the wrapper
    M, K = x2.shape
    w1 = params["w1"]
    aux = params["aux"]
    H = w1.shape[1]

    # Single block for small M; otherwise tile M and let the grid axis be
    # 'parallel' (sharded across the 2 TensorCores on v7x, harmless on v5e/v6e).
    tm = M if M <= tile_m else tile_m
    grid = (pl.cdiv(M, tm),)

    out = pl.pallas_call(
        _progress_kernel,
        out_shape=jax.ShapeDtypeStruct((1, M), jnp.float32),
        grid=grid,
        in_specs=[
            pl.BlockSpec((tm, K), lambda i: (i, 0)),   # activations, tiled over M
            pl.BlockSpec((K, H), lambda i: (0, 0)),    # W1 (VMEM-resident)
            pl.BlockSpec((3, H), lambda i: (0, 0)),    # packed b1 / w2_row / b2
        ],
        out_specs=pl.BlockSpec((1, tm), lambda i: (0, i)),   # lane-dense output
        compiler_params=pltpu.CompilerParams(
            dimension_semantics=("parallel",)),
    )(x2, w1, aux)

    # (1, M) -> (..., 1): pure metadata reshape, elements already in token order.
    return out.reshape(*lead, 1)


# ================================ param init ==================================

def init_params(key, in_dim=IN_DIM, hid_dim=HID_DIM, out_dim=OUT_DIM):
    assert out_dim == 1
    k1, k2, k3, k4 = jax.random.split(key, 4)
    s1 = in_dim ** -0.5
    s2 = hid_dim ** -0.5
    w1 = jax.random.uniform(k1, (in_dim, hid_dim), jnp.float32, -s1, s1)
    b1 = jax.random.uniform(k2, (hid_dim,), jnp.float32, -s1, s1)
    w2 = jax.random.uniform(k3, (hid_dim, out_dim), jnp.float32, -s2, s2)
    b2 = jax.random.uniform(k4, (out_dim,), jnp.float32, -s2, s2)

    # Pack the tiny tail params into ONE (3, H) f32 operand (done once, at init):
    #   row 0 = b1, row 1 = w2[:, 0], row 2 = b2 broadcast.
    aux = jnp.stack([b1, w2[:, 0], jnp.broadcast_to(b2, (hid_dim,))], axis=0)

    return {
        "w1": w1.astype(jnp.bfloat16),    # MXU-native first-layer weight
        "aux": aux.astype(jnp.float32),   # bias / ReLU / layer-2 math stays f32
    }


def progress_estimator_ref(x, params):
    """Pure-JAX reference (same math as the PyTorch module in eval mode)."""
    w1 = params["w1"].astype(jnp.float32)
    b1 = params["aux"][0]
    w2 = params["aux"][1]
    b2 = params["aux"][2, 0]
    h = jnp.maximum(x.astype(jnp.float32) @ w1 + b1, 0.0)
    return jnp.sum(h * w2, axis=-1, keepdims=True) + b2


# ==================================== main ====================================

if __name__ == "__main__":
    key = jax.random.PRNGKey(0)
    kp, kx = jax.random.split(key)

    B, L = 2, 5                                   # (batch, decode length) as in PASTS
    params = init_params(kp)
    x = jax.random.normal(kx, (B, L, IN_DIM), jnp.bfloat16)   # native bf16 activations

    fwd = jax.jit(progress_estimator)
    logits = fwd(x, params)
    jax.block_until_ready(logits)

    assert logits.shape == (B, L, OUT_DIM)
    assert bool(jnp.all(jnp.isfinite(logits)))

    ref = progress_estimator_ref(x, params)
    err = float(jnp.max(jnp.abs(logits - ref)))
    assert bool(jnp.allclose(logits, ref, rtol=1e-4, atol=1e-4)), err

    print("KERNEL_OK")
</pallas_src>

<mosaic_0001>
module attributes {stable_mosaic.version = 11 : i64} {
  func.func @_progress_kernel(%arg0: i32, %arg1: memref<10x32xbf16, #tpu.memory_space<vmem>>, %arg2: memref<32x32xbf16, #tpu.memory_space<vmem>>, %arg3: memref<3x32xf32, #tpu.memory_space<vmem>>, %arg4: memref<1x10xf32, #tpu.memory_space<vmem>>) attributes {dimension_semantics = [#tpu.dimension_semantics<parallel>], iteration_bounds = array<i64: 1>, scalar_prefetch = 0 : i64, scratch_operands = 0 : i64, tpu.core_type = #tpu.core_type<tc>, window_params = [{transform_indices = @transform_0, window_bounds = array<i64: 10, 32>}, {pipeline_mode = #tpu.pipeline_mode<synchronous>, transform_indices = @transform_1, window_bounds = array<i64: 32, 32>}, {pipeline_mode = #tpu.pipeline_mode<synchronous>, transform_indices = @transform_2, window_bounds = array<i64: 3, 32>}, {transform_indices = @transform_3, window_bounds = array<i64: 1, 10>}]} {
    %c0 = arith.constant 0 : index
    %c0_0 = arith.constant 0 : index
    %0 = vector.load %arg1[%c0, %c0_0] : memref<10x32xbf16, #tpu.memory_space<vmem>>, vector<10x32xbf16>
    %c0_1 = arith.constant 0 : index
    %c0_2 = arith.constant 0 : index
    %1 = vector.load %arg2[%c0_1, %c0_2] : memref<32x32xbf16, #tpu.memory_space<vmem>>, vector<32x32xbf16>
    %cst = arith.constant dense<0.000000e+00> : vector<10x32xf32>
    %2 = tpu.matmul %0, %1, %cst {dimension_numbers = #tpu.dot_dimension_numbers<[1], [0], [0], [1], [0, 0, 1, 1], [], []>} : vector<10x32xbf16>, vector<32x32xbf16>, vector<10x32xf32> -> vector<10x32xf32>
    %c0_3 = arith.constant 0 : index
    %c0_4 = arith.constant 0 : index
    %3 = vector.load %arg3[%c0_3, %c0_4] : memref<3x32xf32, #tpu.memory_space<vmem>>, vector<1x32xf32>
    %c1 = arith.constant 1 : index
    %c0_5 = arith.constant 0 : index
    %4 = vector.load %arg3[%c1, %c0_5] : memref<3x32xf32, #tpu.memory_space<vmem>>, vector<1x32xf32>
    %c2 = arith.constant 2 : index
    %c0_6 = arith.constant 0 : index
    %5 = vector.load %arg3[%c2, %c0_6] : memref<3x32xf32, #tpu.memory_space<vmem>>, vector<1x1xf32>
    %6 = vector.broadcast %3 : vector<1x32xf32> to vector<10x32xf32>
    %7 = arith.addf %2, %6 : vector<10x32xf32>
    %cst_7 = arith.constant 0.000000e+00 : f32
    %8 = vector.broadcast %cst_7 : f32 to vector<10x32xf32>
    %9 = arith.maximumf %7, %8 : vector<10x32xf32>
    %10 = vector.broadcast %4 : vector<1x32xf32> to vector<10x32xf32>
    %11 = arith.mulf %9, %10 : vector<10x32xf32>
    %cst_8 = arith.constant dense<0.000000e+00> : vector<10xf32>
    %12 = vector.multi_reduction <add>, %11, %cst_8 [1] : vector<10x32xf32> to vector<10xf32>
    %13 = vector.shape_cast %12 : vector<10xf32> to vector<1x10xf32>
    %14 = vector.broadcast %5 : vector<1x1xf32> to vector<1x10xf32>
    %15 = arith.addf %13, %14 : vector<1x10xf32>
    %c0_9 = arith.constant 0 : index
    %c0_10 = arith.constant 0 : index
    %16 = vector.load %arg4[%c0_9, %c0_10] : memref<1x10xf32, #tpu.memory_space<vmem>>, vector<1x10xf32>
    tpu.vector_store %arg4[%c0_9, %c0_10], %15 {strides = array<i32>} : memref<1x10xf32, #tpu.memory_space<vmem>>, vector<1x10xf32>,
    return
  }
  func.func @transform_0(%arg0: i32) -> (i32, i32) {
    %c0_i32 = arith.constant 0 : i32
    %c0_i32_0 = arith.constant 0 : i32
    return %arg0, %c0_i32 : i32, i32
  }
  func.func @transform_1(%arg0: i32) -> (i32, i32) {
    %c0_i32 = arith.constant 0 : i32
    %c0_i32_0 = arith.constant 0 : i32
    %c0_i32_1 = arith.constant 0 : i32
    return %c0_i32, %c0_i32_0 : i32, i32
  }
  func.func @transform_2(%arg0: i32) -> (i32, i32) {
    %c0_i32 = arith.constant 0 : i32
    %c0_i32_0 = arith.constant 0 : i32
    %c0_i32_1 = arith.constant 0 : i32
    return %c0_i32, %c0_i32_0 : i32, i32
  }
  func.func @transform_3(%arg0: i32) -> (i32, i32) {
    %c0_i32 = arith.constant 0 : i32
    %c0_i32_0 = arith.constant 0 : i32
    return %c0_i32, %arg0 : i32, i32
  }
}

</mosaic_0001>

<bundles_post_ra>
// kernel: progress_estimator.1
= control target key start
LH: loop header
LB: loop body
LE: loop exit
PB: predicated region body
PF: predicated region fallthrough
CT: control target
= control target key end

     0   :  { %v169_v0 = vmov 0.0   ;;  %vm170_vm0 = vmmov 0   ;;  %vm45_vm1 = vcmask 261120   ;;  %v171_v5 = vmov 0   ;;  %s215_s1 = inlined_call_operand.vmem [shape: bf16[32,32], index: 1, kind: input, shape index: {}]   ;;  %s216_s0 = inlined_call_operand.vmem [shape: bf16[10,32], index: 0, kind: input, shape index: {}]   ;;  %s217_s2 = inlined_call_operand.vmem [shape: f32[3,32], index: 2, kind: input, shape index: {}]   ;;  %s218_s3 = inlined_call_operand.vmem [shape: f32[1,10], index: 3, kind: output, shape index: {}]  }
   0x1   :  { %153 = vmatprep.subr.bf16.mxu0 %v169_v0  ;;  %v166_v1 = vld [vmem:[%s215_s1] sm:$0xff]   ;;  %157 = vmatprep.mubr.msk.bf16.mxu0 %vm170_vm0, %v169_v0  ;;  %v167_v2 = vld [vmem:[%s215_s1 + $0x8] sm:$0xff]   ;;  %vm101_vm2 = vcmask 254976   ;;  %v109_v20 = vlaneseq  ;;  %vm135_vm3 = vcmask 130112   ;;  %vm138_vm4 = vcmask 73728  }
   0x2   :  { %154 = vmatpush3.bf16.msra.mxu0 %v166_v1  ;;  %v168_v3 = vld [vmem:[%s216_s0] sm:$0x1f]   ;;  %164 = vset.pattern.permute.xlu1 %v171_v5 }
   0x3   :  { %155 = vmatprep.subr.bf16.mxu0 %v169_v0  ;;  %v23_v4 = vld [vmem:[%s217_s2 + $0x2] sm:$0x1]  ;;  %165 = vset.pattern.permute.xlu0 %v171_v5  ;;  %v144_v6 = vld [vmem:[%s217_s2] ss:$0 sm:$0xff]  ;;  %v149_v11 = vld [vmem:[%s217_s2 + $0x1] ss:$0 sm:$0xff] }
   0x4   :  { %107 = vperm.xlu1 %164, %v23_v4   ;;  %v110_v21 = vshrl.u32 %v109_v20, 7  ;;  %v125_v29 = vand.u32 127, %v109_v20 }
   0x6   :  { %156 = vmatpush3.bf16.msra.mxu0 %v167_v2  ;;  %v111_v22 = vsub.s32 0, %v110_v21  ;;  %v130_v30 = vadd.s32 4294967288, %v125_v29  ;;  %v128_v31 = vsub.s32 %v125_v29, %v110_v21 }
   0x8   :  { %v133_v32 = vsub.s32 %v130_v30, %v110_v21 }
   0x9   :  { %158 = vmatmul.mubr.msk.bf16.vlgmr.msra.gmra.mrb[0].mxu0 %vm45_vm1, %v168_v3 }
  0x83   :  { %v108_v23 = vpop.permute.xlu1 %107 }
  0x84   :  { %v112_v24 = vrot.slane %v108_v23, %v111_v22 }
  0xdc   :  { %v83_v7 = vpop.f32.mrb[0].mxu0 }
  0xdd   :  { %v84_v8 = vadd.f32 %v144_v6, %v83_v7  ;;  %v159_v9 = vpop.f32.mrb[1].mxu0 }
  0xde   :  { %v86_v10 = vpop.f32.mrb[2].mxu0 }
  0xdf   :  { %v90_v12 = vmax.f32 %v84_v8, 0.0  ;;  %v87_v13 = vadd.f32 %v144_v6, %v86_v10  ;;  %v160_v14 = vpop.f32.mrb[3].mxu0 }
  0xe1   :  { %v91_v15 = vmax.f32 %v87_v13, 0.0  ;;  %v96_v16 = vmul.f32 %v149_v11, %v90_v12 }
  0xe3   :  { %v98_v17 = vsel %vm45_vm1, %v96_v16, 0.0  ;;  %v97_v18 = vmul.f32 %v149_v11, %v91_v15 }
  0xe4   :  { %99 = vadd.xlane.f32.xlu0 %v98_v17 }
  0xe5   :  { %v102_v19 = vsel %vm101_vm2, %v97_v18, 0.0 }
  0xe8   :  { %103 = vadd.xlane.f32.xlu0 %v102_v19 }
 0x171   :  { %v100_v25 = vpop.xlane.xlu0 %99 }
 0x172   :  { %v114_v26 = vadd.f32 %v112_v24, %v100_v25 }
 0x174   :  { %119 = vperm.xlu1 %164, %v114_v26  }
 0x175   :  { %v104_v27 = vpop.xlane.xlu0 %103 }
 0x176   :  { %v115_v28 = vadd.f32 %v112_v24, %v104_v27 }
 0x178   :  { %122 = vperm.xlu0 %165, %v115_v28  }
 0x1f3   :  { %v120_v33 = vpop.permute.xlu1 %119 }
 0x1f4   :  { %v129_v35 = vrot.slane %v120_v33, %v128_v31 }
 0x1f7   :  { %v123_v34 = vpop.permute.xlu0 %122 }
 0x1f8   :  { %v134_v36 = vrot.slane %v123_v34, %v133_v32 }
 0x1fa   :  { %v136_v37 = vsel %vm135_vm3, %v134_v36, %v129_v35 }
 0x1fb   :  { %139 = vst.msk [vmem:[%s218_s3] sm:$0x1] %vm138_vm4, %v136_v37 }

</bundles_post_ra>
